<compile_context>
chip_gen: v5e
topology: v5e:2x2
jax: 0.10.0
libtpu: 0.0.40
codegen_flags: <defaults>
</compile_context>

<pallas_src>
import functools

import jax
import jax.numpy as jnp
from jax.experimental import pallas as pl
from jax.experimental.pallas import tpu as pltpu


_MAX_BLOCK_ELEMS = 512 * 1024          # ~2 MiB per f32 block
_VMEM_LIMIT_BYTES = 48 * 1024 * 1024   # safe on v5e/v6e (128 MiB) and v7x (64 MiB)


def _pick_tile(total, unit, cap):
    """Largest multiple of `unit` that divides `total` and is <= cap.

    Falls back to `total` (full extent — always a legal block shape) when no
    such divisor exists, so no padded elements ever enter the statistics.
    """
    best = None
    d = unit
    limit = min(total, cap)
    while d <= limit:
        if total % d == 0:
            best = d
        d += unit
    return best if best is not None else total


def _stats_kernel(x_ref, sum_ref, sq_ref):
    """Pass 1: per-channel sum and sum-of-squares.

    grid = (C/C_tile, N, HW/HW_tile); axes 1 & 2 are the reduction.  The
    (C_tile, 1) output blocks map to the same block index for every reduction
    step, so they stay VMEM-resident and act as accumulators.
    """
    first = jnp.logical_and(pl.program_id(1) == 0, pl.program_id(2) == 0)

    @pl.when(first)
    def _():
        sum_ref[...] = jnp.zeros_like(sum_ref)
        sq_ref[...] = jnp.zeros_like(sq_ref)

    x = x_ref[0].astype(jnp.float32)                 # (C_tile, HW_tile)
    sum_ref[...] += jnp.sum(x, axis=-1, keepdims=True)
    sq_ref[...] += jnp.sum(x * x, axis=-1, keepdims=True)


def _apply_kernel(x_ref, scale_ref, shift_ref, o_ref, *, activation,
                  activation_param):
    """Pass 2: y = x*scale + shift, fused activation, lane-dense store."""
    x = x_ref[0].astype(jnp.float32)                 # (C_tile, HW_tile)
    y = x * scale_ref[...] + shift_ref[...]          # (C_tile, 1) broadcasts

    if activation == "relu":
        y = jnp.maximum(y, 0.0)
    elif activation == "leaky_relu":
        y = jnp.where(y >= 0.0, y, y * activation_param)
    elif activation == "elu":
        y = jnp.where(y >= 0.0, y, activation_param * (jnp.exp(y) - 1.0))
    # "identity": no-op

    o_ref[0] = y.astype(o_ref.dtype)


def inplace_abn_forward(
    x_nchw,
    weight=None,
    bias=None,
    *,
    eps=1e-5,
    momentum=0.1,
    activation="leaky_relu",
    activation_param=0.01,
    running_mean=None,
    running_var=None,
):
    """InPlaceABN forward in training mode (batch statistics).

    Returns y, or (y, new_running_mean, new_running_var) when running stats
    are supplied (momentum EMA with unbiased variance, matching F.batch_norm).
    """
    if activation not in ("relu", "leaky_relu", "elu", "identity"):
        raise RuntimeError("Unknown activation function {}".format(activation))

    N, C, H, W = x_nchw.shape
    HW = H * W
    x3 = x_nchw.reshape(N, C, HW)     # free reshape: NCHW stays contiguous
    itemsize = jnp.dtype(x3.dtype).itemsize
    total = N * C * HW

    c_tile = _pick_tile(C, 8, 64)
    hw_cap = min(8192, max(128, _MAX_BLOCK_ELEMS // max(c_tile, 1)))
    hw_tile = _pick_tile(HW, 128, hw_cap)
    grid = (C // c_tile, N, HW // hw_tile)

    x_spec = pl.BlockSpec((1, c_tile, hw_tile), lambda c, n, hw: (n, c, hw))
    ch_spec = pl.BlockSpec((c_tile, 1), lambda c, n, hw: (c, 0))

    # ---------------- pass 1: per-channel sum / sumsq ----------------
    sums, sqs = pl.pallas_call(
        _stats_kernel,
        out_shape=(jax.ShapeDtypeStruct((C, 1), jnp.float32),
                   jax.ShapeDtypeStruct((C, 1), jnp.float32)),
        grid_spec=pltpu.PrefetchScalarGridSpec(
            num_scalar_prefetch=0,
            grid=grid,
            in_specs=[x_spec],
            out_specs=(ch_spec, ch_spec)),
        compiler_params=pltpu.CompilerParams(
            dimension_semantics=("parallel", "arbitrary", "arbitrary"),
            vmem_limit_bytes=_VMEM_LIMIT_BYTES),
        cost_estimate=pl.CostEstimate(
            flops=3 * total,
            transcendentals=0,
            bytes_accessed=total * itemsize + 8 * C),
    )(x3)

    # ------- fold affine once per channel: scale = w*inv_std, shift = b - mean*scale
    count = jnp.float32(N * HW)
    mean = sums / count
    var = jnp.maximum(sqs / count - mean * mean, 0.0)   # biased var (training path)
    inv_std = jax.lax.rsqrt(var + jnp.float32(eps))
    w = (jnp.ones((C, 1), jnp.float32) if weight is None
         else weight.reshape(C, 1).astype(jnp.float32))
    b = (jnp.zeros((C, 1), jnp.float32) if bias is None
         else bias.reshape(C, 1).astype(jnp.float32))
    scale = w * inv_std
    shift = b - mean * scale

    # ---------------- pass 2: normalize + affine + activation ----------------
    apply_kernel = functools.partial(
        _apply_kernel,
        activation=activation,
        activation_param=float(activation_param))
    y3 = pl.pallas_call(
        apply_kernel,
        out_shape=jax.ShapeDtypeStruct((N, C, HW), x3.dtype),
        grid_spec=pltpu.PrefetchScalarGridSpec(
            num_scalar_prefetch=0,
            grid=grid,
            in_specs=[x_spec, ch_spec, ch_spec],
            out_specs=x_spec),
        compiler_params=pltpu.CompilerParams(
            dimension_semantics=("parallel", "parallel", "arbitrary"),
            vmem_limit_bytes=_VMEM_LIMIT_BYTES),
        cost_estimate=pl.CostEstimate(
            flops=4 * total,
            transcendentals=total if activation == "elu" else 0,
            bytes_accessed=2 * total * itemsize + 8 * C),
    )(x3, scale, shift)

    y = y3.reshape(N, C, H, W)

    if running_mean is not None and running_var is not None:
        n = float(N * HW)
        unbiased = var[:, 0] * (n / max(n - 1.0, 1.0))
        new_rm = ((1.0 - momentum) * running_mean.astype(jnp.float32)
                  + momentum * mean[:, 0])
        new_rv = ((1.0 - momentum) * running_var.astype(jnp.float32)
                  + momentum * unbiased)
        return y, new_rm, new_rv
    return y


def _reference(x_nchw, weight, bias, eps=1e-5, activation_param=0.01):
    x = x_nchw.astype(jnp.float32)
    mean = jnp.mean(x, axis=(0, 2, 3), keepdims=True)
    var = jnp.mean((x - mean) ** 2, axis=(0, 2, 3), keepdims=True)
    y = (x - mean) * jax.lax.rsqrt(var + eps)
    y = y * weight.reshape(1, -1, 1, 1) + bias.reshape(1, -1, 1, 1)
    return jnp.where(y >= 0.0, y, y * activation_param).astype(x_nchw.dtype)


if __name__ == "__main__":
    num_features = 4
    N, H, W = 2, 16, 16

    key = jax.random.PRNGKey(0)
    kx, kw, kb = jax.random.split(key, 3)
    x = jax.random.normal(kx, (N, num_features, H, W), dtype=jnp.float32)
    # Deterministic non-trivial affine params to exercise the scale/shift path
    # (ABN.reset_parameters() would give ones/zeros, which is a weaker test).
    weight = 1.0 + 0.1 * jax.random.normal(kw, (num_features,), dtype=jnp.float32)
    bias = 0.1 * jax.random.normal(kb, (num_features,), dtype=jnp.float32)

    out = inplace_abn_forward(
        x, weight, bias, eps=1e-5, activation="leaky_relu", activation_param=0.01)
    out = jax.block_until_ready(out)

    ref = _reference(x, weight, bias, eps=1e-5, activation_param=0.01)
    assert out.shape == x.shape
    assert out.dtype == x.dtype
    assert jnp.allclose(out, ref, atol=1e-4, rtol=1e-4), float(
        jnp.max(jnp.abs(out - ref)))

    print("KERNEL_OK")
</pallas_src>

<mosaic_0001>
module attributes {stable_mosaic.version = 11 : i64} {
  func.func @_stats_kernel(%arg0: i32, %arg1: i32, %arg2: i32, %arg3: memref<1x4x256xf32, #tpu.memory_space<vmem>>, %arg4: memref<4x1xf32, #tpu.memory_space<vmem>>, %arg5: memref<4x1xf32, #tpu.memory_space<vmem>>) attributes {dimension_semantics = [#tpu.dimension_semantics<parallel>, #tpu.dimension_semantics<arbitrary>, #tpu.dimension_semantics<arbitrary>], iteration_bounds = array<i64: 1, 2, 1>, scalar_prefetch = 0 : i64, scratch_operands = 0 : i64, tpu.core_type = #tpu.core_type<tc>, window_params = [{transform_indices = @transform_0, window_bounds = array<i64: 1, 4, 256>}, {transform_indices = @transform_1, window_bounds = array<i64: 4, 1>}, {transform_indices = @transform_2, window_bounds = array<i64: 4, 1>}]} {
    %c0_i32 = arith.constant 0 : i32
    %0 = arith.cmpi eq, %arg1, %c0_i32 : i32
    %c0_i32_0 = arith.constant 0 : i32
    %1 = arith.cmpi eq, %arg2, %c0_i32_0 : i32
    %2 = arith.andi %0, %1 : i1
    %3 = arith.extui %2 : i1 to i32
    %c0_i32_1 = arith.constant 0 : i32
    %4 = arith.cmpi ne, %3, %c0_i32_1 : i32
    scf.if %4 {
      %cst_13 = arith.constant 0.000000e+00 : f32
      %18 = vector.broadcast %cst_13 : f32 to vector<4x1xf32>
      %c0_14 = arith.constant 0 : index
      %c0_15 = arith.constant 0 : index
      %19 = vector.load %arg4[%c0_14, %c0_15] : memref<4x1xf32, #tpu.memory_space<vmem>>, vector<4x1xf32>
      tpu.vector_store %arg4[%c0_14, %c0_15], %18 {strides = array<i32>} : memref<4x1xf32, #tpu.memory_space<vmem>>, vector<4x1xf32>,
      %cst_16 = arith.constant 0.000000e+00 : f32
      %20 = vector.broadcast %cst_16 : f32 to vector<4x1xf32>
      %c0_17 = arith.constant 0 : index
      %c0_18 = arith.constant 0 : index
      %21 = vector.load %arg5[%c0_17, %c0_18] : memref<4x1xf32, #tpu.memory_space<vmem>>, vector<4x1xf32>
      tpu.vector_store %arg5[%c0_17, %c0_18], %20 {strides = array<i32>} : memref<4x1xf32, #tpu.memory_space<vmem>>, vector<4x1xf32>,
    } else {
    }
    %c0 = arith.constant 0 : index
    %c0_2 = arith.constant 0 : index
    %c0_3 = arith.constant 0 : index
    %5 = vector.load %arg3[%c0, %c0_2, %c0_3] : memref<1x4x256xf32, #tpu.memory_space<vmem>>, vector<1x4x256xf32>
    %6 = vector.shape_cast %5 : vector<1x4x256xf32> to vector<4x256xf32>
    %c0_4 = arith.constant 0 : index
    %c0_5 = arith.constant 0 : index
    %7 = vector.load %arg4[%c0_4, %c0_5] : memref<4x1xf32, #tpu.memory_space<vmem>>, vector<4x1xf32>
    %cst = arith.constant dense<0.000000e+00> : vector<4xf32>
    %8 = vector.multi_reduction <add>, %6, %cst [1] : vector<4x256xf32> to vector<4xf32>
    %9 = vector.shape_cast %8 : vector<4xf32> to vector<4x1xf32>
    %10 = arith.addf %7, %9 : vector<4x1xf32>
    %c0_6 = arith.constant 0 : index
    %c0_7 = arith.constant 0 : index
    %11 = vector.load %arg4[%c0_6, %c0_7] : memref<4x1xf32, #tpu.memory_space<vmem>>, vector<4x1xf32>
    tpu.vector_store %arg4[%c0_6, %c0_7], %10 {strides = array<i32>} : memref<4x1xf32, #tpu.memory_space<vmem>>, vector<4x1xf32>,
    %c0_8 = arith.constant 0 : index
    %c0_9 = arith.constant 0 : index
    %12 = vector.load %arg5[%c0_8, %c0_9] : memref<4x1xf32, #tpu.memory_space<vmem>>, vector<4x1xf32>
    %13 = arith.mulf %6, %6 : vector<4x256xf32>
    %cst_10 = arith.constant dense<0.000000e+00> : vector<4xf32>
    %14 = vector.multi_reduction <add>, %13, %cst_10 [1] : vector<4x256xf32> to vector<4xf32>
    %15 = vector.shape_cast %14 : vector<4xf32> to vector<4x1xf32>
    %16 = arith.addf %12, %15 : vector<4x1xf32>
    %c0_11 = arith.constant 0 : index
    %c0_12 = arith.constant 0 : index
    %17 = vector.load %arg5[%c0_11, %c0_12] : memref<4x1xf32, #tpu.memory_space<vmem>>, vector<4x1xf32>
    tpu.vector_store %arg5[%c0_11, %c0_12], %16 {strides = array<i32>} : memref<4x1xf32, #tpu.memory_space<vmem>>, vector<4x1xf32>,
    return
  }
  func.func @transform_0(%arg0: i32, %arg1: i32, %arg2: i32) -> (i32, i32, i32) {
    %c0_i32 = arith.constant 0 : i32
    return %arg1, %arg0, %arg2 : i32, i32, i32
  }
  func.func @transform_1(%arg0: i32, %arg1: i32, %arg2: i32) -> (i32, i32) {
    %c0_i32 = arith.constant 0 : i32
    %c0_i32_0 = arith.constant 0 : i32
    return %arg0, %c0_i32 : i32, i32
  }
  func.func @transform_2(%arg0: i32, %arg1: i32, %arg2: i32) -> (i32, i32) {
    %c0_i32 = arith.constant 0 : i32
    %c0_i32_0 = arith.constant 0 : i32
    return %arg0, %c0_i32 : i32, i32
  }
}

</mosaic_0001>

<bundles_post_ra>
// kernel: tpu_custom_call.1
= control target key start
LH: loop header
LB: loop body
LE: loop exit
PB: predicated region body
PF: predicated region fallthrough
CT: control target
= control target key end

     0   :  { %8 = vsyncpa [#allocation3], 0  ;;  %s619_s0 = inlined_call_operand.hbm [shape: f32[2,4,256], index: 0, kind: input, shape index: {}]   ;;  %s620_s1 = inlined_call_operand.vmem [shape: f32[4,1], index: 1, kind: output, shape index: {0}]   ;;  %s621_s2 = inlined_call_operand.vmem [shape: f32[4,1], index: 2, kind: output, shape index: {1}]  }
   0x1   :  { %10 = vsyncpa [#allocation3 + $0x1], 0  ;;  %s517_s9 = smov 0   ;;  %s519_s10 = smov 0  }
   0x2   :  { %s521_s11 = smov 0   ;;  %s523_s12 = smov 0  }
   0x3   :  { %s525_s13 = smov 0   ;;  %s527_s14 = smov 0  }
   0x4 LB: > { %s348_s15 = sadd.s32 4294967295, %s499_s14   ;;  %s31_s16 = sadd.s32 1, %s495_s13  ;;  %s499_s14 = sphi %s527_s14, %s16_s14   ;;  %s495_s13 = sphi %s525_s13, %s628_s13   ;;  %s491_s12 = sphi %s523_s12, %s627_s12   ;;  %s487_s11 = sphi %s521_s11, %s626_s11   ;;  %s483_s10 = sphi %s519_s10, %s625_s10   ;;  %s479_s9 = sphi %s517_s9, %s624_s9  }
   0x5   : > { %p33_p0 = scmp.ge.s32.totalorder %s31_s16, 2  ;;  %s46_s17 = sadd.s32 1, %s487_s11 }
   0x6   : > { %p53_p1 = scmp.ne.s32.totalorder %s487_s11, %s483_s10  ;;  %p54_p2 = scmp.eq.s32.totalorder %s499_s14, 0 }
   0x7   : > { %s630_s16 = smov (%p33_p0, %s31_s16), 0  ;;  %p59_p4 = scmp.ne.s32.totalorder %s483_s10, %s479_s9 }
   0x8   : > { %p553_p3 = por %p54_p2, %p53_p1  ;;  %s39_s19 = ssub.s32 %s495_s13, %s630_s16 }
   0x9   : > { %p60_p5 = scmp.eq.s32.totalorder %s348_s15, 0  ;;  %p44_p6 = scmp.eq.s32.totalorder %s39_s19, 0 }
   0xa   : > { %p369_p8 = scmp.lt.s32.totalorder %s499_s14, 2  ;;  %s135_s22 = sand.u32 1, %s487_s11  }
   0xb   : > { %p560_p7 = por %p60_p5, %p59_p4  ;;  %s361_s23 = sshll.u32 %s495_s13, 3 }
   0xc   : > { %s566_s21 = scalar_select %p44_p6, %s487_s11, %s46_s17  }
   0xd   : > { %s351_s24 = sshll.u32 %s135_s22, 3  ;;  %s148_s27 = scalar_lea.hbm %s619_s0, %s361_s23 }
   0xe   : > { %s150_s28 = sshll.u32 %s148_s27, 4  ;;  %s139_s29 = scalar_lea.vmem [#allocation2], %s351_s24  ;;  %s151_s28 = int_to_ptr.hbm [resolvable:$true] %s150_s28 }
   0xf   : > { %s152_s30 = sshll.u32 %s139_s29, 4  ;;  %p366_p9 = pnand %p369_p8, %p553_p3  ;;  %s153_s30 = int_to_ptr.vmem [resolvable:$true] %s152_s30 }
  0x10   : > { %p354_p10 = scmp.ge.s32.totalorder %s499_s14, 1  ;;  %p157_p11 = scmp.lt.s32.totalorder %s499_s14, 3 }
  0x11   : > { %s136_s3 = scalar_lea.sflag [#allocation3], %s135_s22 }
  0x12   : > { %368 = dma.hbm_to_vmem [thread:$0]  (!%p366_p9), %s151_s28, 128, %s153_s30, %s136_s3  }
  0x13   : > { %p158_p12 = pnand %p354_p10, %p157_p11 }
  0x14   : > { %s163_s4 = sand.u32 (!%p158_p12), 1, %s483_s10  }
  0x15   : > { %161 = sbr.rel (%p158_p12) target bundleno = 173 (0xad), region = 24  ;;  %s355_s5 = sshll.u32 (!%p158_p12), %s163_s4, 3 }
  0x16   : > { %s164_s6 = scalar_lea.sflag (!%p158_p12), [#allocation3], %s163_s4  ;;  %s167_s7 = scalar_lea.vmem (!%p158_p12), [#allocation2], %s355_s5 }
  0x1a   : > { %474 = dma.done.wait (%p560_p7), %s164_s6, 128  }
  0x1b   : > { %476 = vsyncadd (%p560_p7), %s164_s6, 4294967168  ;;  %p201_p13 = scmp.eq.s32.totalorder %s491_s12, 0 }
  0x1c   : > { %vm207_vm0 = vcmask (%p201_p13), 3072   ;;  %v501_v0 = vmov (%p201_p13), 0.0  }
  0x1d   : > { %206 = sbr.rel (!%p201_p13) target bundleno = 34 (0x22), region = 32  ;;  %208 = vst.msk [vmem:[%s620_s1] sm:$0xf] (%p201_p13), %vm207_vm0, %v501_v0 }
  0x1e   : > { %209 = vst.msk [vmem:[%s621_s2] sm:$0xf] (%p201_p13), %vm207_vm0, %v501_v0 }
  0x22 PF: > { %v210_v1 = vld [vmem:[%s167_s7] sm:$0xff]  ;;  %vm218_vm1 = vcmask 1043456   ;;  %vm225_vm2 = vcmask 3072  }
  0x23   : > { %213 = vst [vmem:[#allocation1] ss:$2 sm:$0xff] %v210_v1  ;;  %v228_v2 = vmul.f32 %v210_v1, %v210_v1 }
  0x24   : > { %v211_v13 = vld [vmem:[%s620_s1] sm:$0xf] }
  0x25   : > { %v227_v16 = vld [vmem:[%s621_s2] sm:$0xf] }
  0x2a   : > { %v214_v3 = vld.sshfl [vmem:[#allocation1] sm:$0xff pattern:$0x75316420]  ;;  %v215_v4 = vld.sshfl [vmem:[#allocation1 + $0x8] sm:$0xff pattern:$0x75316420] }
  0x2b   : > { %v219_v5 = vsel %vm218_vm1, %v214_v3, 0.0  ;;  %v220_v6 = vsel %vm218_vm1, %v215_v4, 0.0  ;;  %230 = vst [vmem:[#allocation1] ss:$2 sm:$0xff] %v228_v2 }
  0x2c   : > { %v221_v7 = vadd.f32 %v220_v6, %v219_v5 }
  0x2e   : > { %222 = vadd.xlane.f32.xlu0 %v221_v7 }
  0x32   : > { %v231_v8 = vld.sshfl [vmem:[#allocation1] sm:$0xff pattern:$0x75316420]  ;;  %v232_v9 = vld.sshfl [vmem:[#allocation1 + $0x8] sm:$0xff pattern:$0x75316420] }
  0x33   : > { %v235_v10 = vsel %vm218_vm1, %v231_v8, 0.0  ;;  %v236_v11 = vsel %vm218_vm1, %v232_v9, 0.0 }
  0x34   : > { %v237_v12 = vadd.f32 %v236_v11, %v235_v10 }
  0x36   : > { %238 = vadd.xlane.f32.xlu0 %v237_v12 }
  0xa1   : > { %v223_v14 = vpop.xlane.xlu0 %222 }
  0xa2   : > { %v224_v15 = vadd.f32 %v223_v14, %v211_v13 }
  0xa4   : > { %226 = vst.msk [vmem:[%s620_s1] sm:$0xf] %vm225_vm2, %v224_v15 }
  0xa9   : > { %v239_v17 = vpop.xlane.xlu0 %238 }
  0xaa   : > { %v240_v18 = vadd.f32 %v239_v17, %v227_v16 }
  0xac   : > { %241 = vst.msk [vmem:[%s621_s2] sm:$0xf] %vm225_vm2, %v240_v18 }
  0xad PF: > { %s16_s14 = sadd.s32 1, %s499_s14   ;;  %s624_s9 = smov %s483_s10 }
  0xae   : > { %p13_p0 = scmp.ge.s32.totalorder %s16_s14, 4   ;;  %s625_s10 = smov %s487_s11 }
  0xaf   : > { %s626_s11 = smov %s566_s21  ;;  %s627_s12 = smov %s495_s13 }
  0xb0   : > { %s628_s13 = smov %s630_s16  ;;  %15 = sbr.rel (!%p13_p0) target bundleno = 4 (0x4), region = 80 }
  0xb5   :  { %275 = vsyncpa [#allocation3], 1 }
  0xb6   :  { %277 = vsyncpa [#allocation3 + $0x1], 1 }

</bundles_post_ra>
